<compile_context>
chip_gen: v5e
topology: v5e:2x2
jax: 0.10.0
libtpu: 0.0.40
codegen_flags: <defaults>
</compile_context>

<pallas_src>
import jax
import jax.numpy as jnp
from jax.experimental import pallas as pl
from jax.experimental.pallas import tpu as pltpu

H1, H2 = 400, 300            # reference hidden widths
H1_PAD, H2_PAD = 512, 384    # lane-dense padded widths (multiples of 128)


def _round_up(x: int, m: int) -> int:
    return (x + m - 1) // m * m


def _next_pow2(n: int) -> int:
    p = 1
    while p < n:
        p *= 2
    return p


def _choose_tiling(batch: int):
    """Bucketed batch padding + tile size (avoids per-batch retraces)."""
    b_pad = max(16, _next_pow2(batch))
    if b_pad >= 2048:
        tm = 1024                 # big batches: amortize per-step overhead
    elif b_pad >= 512:
        tm = b_pad // 2           # moderate: >=2 tiles so v7x megacore shards
    else:
        tm = b_pad                # small (RL rollout): one tile, no splitting
    return tm, b_pad


def _actor_kernel_factory(max_action: float):
    """Builds the fused 3-layer MLP kernel with max_action baked in."""

    def actor_kernel(x_ref, w1_ref, b1_ref, w2_ref, b2_ref, w3_ref, b3_ref,
                     o_ref):
        x = x_ref[...]                                   # (TM, S_pad) bf16

        # Layer 1: Linear(S_pad, 512) + ReLU, fused bf16 down-cast.
        h1 = jnp.dot(x, w1_ref[...], preferred_element_type=jnp.float32)
        h1 = jnp.maximum(h1 + b1_ref[...], 0.0).astype(jnp.bfloat16)

        # Layer 2: Linear(512, 384) + ReLU, fused bf16 down-cast.
        h2 = jnp.dot(h1, w2_ref[...], preferred_element_type=jnp.float32)
        h2 = jnp.maximum(h2 + b2_ref[...], 0.0).astype(jnp.bfloat16)

        # Layer 3: Linear(384, A_pad), then max_action * tanh (EUP).
        h3 = jnp.dot(h2, w3_ref[...], preferred_element_type=jnp.float32)
        h3 = h3 + b3_ref[...]
        o_ref[...] = (max_action * jnp.tanh(h3)).astype(o_ref.dtype)

    return actor_kernel


def prepare_actor_params(params):
    """Zero-pad state/hidden/action dims to lane multiples, cast weights bf16.

    Zero padding is exact: padded x columns hit zero-padded w1 rows, padded w1
    columns produce h1 == relu(0 + 0) == 0 which hit zero-padded w2 rows, etc.
    Padded output columns are sliced off in the wrapper.
    """
    f32, bf16 = jnp.float32, jnp.bfloat16
    state_dim = params["w1"].shape[0]
    action_dim = params["w3"].shape[1]
    s_pad = _round_up(state_dim, 128)
    a_pad = _round_up(action_dim, 128)

    w1 = jnp.pad(params["w1"].astype(f32),
                 ((0, s_pad - state_dim), (0, H1_PAD - H1))).astype(bf16)
    b1 = jnp.pad(params["b1"].astype(f32),
                 (0, H1_PAD - H1)).reshape(1, -1)                  # (1, 512)
    w2 = jnp.pad(params["w2"].astype(f32),
                 ((0, H1_PAD - H1), (0, H2_PAD - H2))).astype(bf16)
    b2 = jnp.pad(params["b2"].astype(f32),
                 (0, H2_PAD - H2)).reshape(1, -1)                  # (1, 384)
    w3 = jnp.pad(params["w3"].astype(f32),
                 ((0, H2_PAD - H2), (0, a_pad - action_dim))).astype(bf16)
    b3 = jnp.pad(params["b3"].astype(f32),
                 (0, a_pad - action_dim)).reshape(1, -1)           # (1, A_pad)

    return {"w1": w1, "b1": b1, "w2": w2, "b2": b2, "w3": w3, "b3": b3,
            "state_dim": state_dim, "s_pad": s_pad,
            "action_dim": action_dim, "a_pad": a_pad}


def actor_forward(x, prepped, max_action: float):
    """Run the Actor MLP as a single fused, batch-tiled Pallas kernel.

    x: (batch, state_dim) float-like
    prepped: output of prepare_actor_params
    """
    x = x.astype(jnp.float32)   # mirrors `x = x.float()` in the reference
    batch, state_dim = x.shape
    assert state_dim == prepped["state_dim"]
    s_pad = prepped["s_pad"]
    action_dim, a_pad = prepped["action_dim"], prepped["a_pad"]

    tm, b_pad = _choose_tiling(batch)
    # Pad batch (bucketed) and state dim (lane-dense), cast to bf16.
    x_p = jnp.pad(x, ((0, b_pad - batch),
                      (0, s_pad - state_dim))).astype(jnp.bfloat16)

    kernel = _actor_kernel_factory(float(max_action))
    grid = (b_pad // tm,)

    out = pl.pallas_call(
        kernel,
        out_shape=jax.ShapeDtypeStruct((b_pad, a_pad), jnp.float32),
        grid_spec=pltpu.PrefetchScalarGridSpec(
            num_scalar_prefetch=0,
            grid=grid,
            in_specs=[
                # Batch-tiled activations (lane-dense: s_pad % 128 == 0).
                pl.BlockSpec((tm, s_pad), lambda i: (i, 0)),
                # Weights / biases: same block every step -> VMEM-resident,
                # never re-DMA'd across the batch grid.
                pl.BlockSpec((s_pad, H1_PAD), lambda i: (0, 0)),
                pl.BlockSpec((1, H1_PAD), lambda i: (0, 0)),
                pl.BlockSpec((H1_PAD, H2_PAD), lambda i: (0, 0)),
                pl.BlockSpec((1, H2_PAD), lambda i: (0, 0)),
                pl.BlockSpec((H2_PAD, a_pad), lambda i: (0, 0)),
                pl.BlockSpec((1, a_pad), lambda i: (0, 0)),
            ],
            out_specs=pl.BlockSpec((tm, a_pad), lambda i: (i, 0)),
        ),
        compiler_params=pltpu.CompilerParams(
            dimension_semantics=("parallel",)),
    )(x_p, prepped["w1"], prepped["b1"], prepped["w2"], prepped["b2"],
      prepped["w3"], prepped["b3"])

    return out[:batch, :action_dim]


def init_actor_params(key, state_dim, action_dim):
    """Init matching PyTorch Linear default U(-1/sqrt(fan_in), 1/sqrt(fan_in))."""
    ks = jax.random.split(key, 6)

    def linear(kw, kb, fan_in, fan_out):
        bound = 1.0 / jnp.sqrt(jnp.float32(fan_in))
        w = jax.random.uniform(kw, (fan_in, fan_out), jnp.float32, -bound, bound)
        b = jax.random.uniform(kb, (fan_out,), jnp.float32, -bound, bound)
        return w, b

    w1, b1 = linear(ks[0], ks[1], state_dim, H1)
    w2, b2 = linear(ks[2], ks[3], H1, H2)
    w3, b3 = linear(ks[4], ks[5], H2, action_dim)
    return {"w1": w1, "b1": b1, "w2": w2, "b2": b2, "w3": w3, "b3": b3}


def actor_reference_f32(x, params, max_action):
    """Pure-JAX f32 reference of the original module."""
    h = jnp.maximum(x @ params["w1"] + params["b1"], 0.0)
    h = jnp.maximum(h @ params["w2"] + params["b2"], 0.0)
    return max_action * jnp.tanh(h @ params["w3"] + params["b3"])


def actor_reference_bf16(x, params, max_action):
    """Pure-JAX reference mirroring the kernel's bf16-input / f32-accum math."""
    bf = jnp.bfloat16
    h = jnp.dot(x.astype(bf), params["w1"].astype(bf),
                preferred_element_type=jnp.float32) + params["b1"]
    h = jnp.maximum(h, 0.0).astype(bf)
    h = jnp.dot(h, params["w2"].astype(bf),
                preferred_element_type=jnp.float32) + params["b2"]
    h = jnp.maximum(h, 0.0).astype(bf)
    h = jnp.dot(h, params["w3"].astype(bf),
                preferred_element_type=jnp.float32) + params["b3"]
    return max_action * jnp.tanh(h)


if __name__ == "__main__":
    key = jax.random.PRNGKey(0)
    k_param, k_x1, k_x2 = jax.random.split(key, 3)

    # Small, module-consistent shapes: state_dim=16, action_dim=4.
    state_dim, action_dim = 16, 4
    max_action = 2.0

    params = init_actor_params(k_param, state_dim, action_dim)
    prepped = prepare_actor_params(params)   # pad + bf16-cast once, reuse

    def check(x):
        out = actor_forward(x, prepped, max_action)
        out = jax.block_until_ready(out)
        assert out.shape == (x.shape[0], action_dim)

        # Tight check vs. a reference doing the same bf16/f32-accum math.
        ref_bf16 = actor_reference_bf16(x, params, max_action)
        err_bf16 = float(jnp.max(jnp.abs(out - ref_bf16)))
        assert jnp.allclose(out, ref_bf16, atol=1e-2, rtol=1e-2), (
            f"max abs err vs bf16 ref = {err_bf16}")

        # Sanity check vs. exact f32 module semantics (loose tol, bf16 path).
        ref_f32 = actor_reference_f32(x, params, max_action)
        err_f32 = float(jnp.max(jnp.abs(out - ref_f32)))
        assert jnp.allclose(out, ref_f32, atol=1e-1, rtol=1e-1), (
            f"max abs err vs f32 ref = {err_f32}")

    # Tiny RL-rollout-style batch and a batch that exercises padding/slicing.
    check(jax.random.normal(k_x1, (4, state_dim), jnp.float32))
    check(jax.random.normal(k_x2, (20, state_dim), jnp.float32))

    print("KERNEL_OK")
</pallas_src>

<mosaic_0001>
module attributes {stable_mosaic.version = 11 : i64} {
  func.func @actor_kernel(%arg0: i32, %arg1: memref<16x128xbf16, #tpu.memory_space<vmem>>, %arg2: memref<128x512xbf16, #tpu.memory_space<vmem>>, %arg3: memref<1x512xf32, #tpu.memory_space<vmem>>, %arg4: memref<512x384xbf16, #tpu.memory_space<vmem>>, %arg5: memref<1x384xf32, #tpu.memory_space<vmem>>, %arg6: memref<384x128xbf16, #tpu.memory_space<vmem>>, %arg7: memref<1x128xf32, #tpu.memory_space<vmem>>, %arg8: memref<16x128xf32, #tpu.memory_space<vmem>>) attributes {dimension_semantics = [#tpu.dimension_semantics<parallel>], iteration_bounds = array<i64: 1>, scalar_prefetch = 0 : i64, scratch_operands = 0 : i64, tpu.core_type = #tpu.core_type<tc>, window_params = [{transform_indices = @transform_0, window_bounds = array<i64: 16, 128>}, {pipeline_mode = #tpu.pipeline_mode<synchronous>, transform_indices = @transform_1, window_bounds = array<i64: 128, 512>}, {pipeline_mode = #tpu.pipeline_mode<synchronous>, transform_indices = @transform_2, window_bounds = array<i64: 1, 512>}, {pipeline_mode = #tpu.pipeline_mode<synchronous>, transform_indices = @transform_3, window_bounds = array<i64: 512, 384>}, {pipeline_mode = #tpu.pipeline_mode<synchronous>, transform_indices = @transform_4, window_bounds = array<i64: 1, 384>}, {pipeline_mode = #tpu.pipeline_mode<synchronous>, transform_indices = @transform_5, window_bounds = array<i64: 384, 128>}, {pipeline_mode = #tpu.pipeline_mode<synchronous>, transform_indices = @transform_6, window_bounds = array<i64: 1, 128>}, {transform_indices = @transform_7, window_bounds = array<i64: 16, 128>}]} {
    %c0 = arith.constant 0 : index
    %c0_0 = arith.constant 0 : index
    %0 = vector.load %arg1[%c0, %c0_0] : memref<16x128xbf16, #tpu.memory_space<vmem>>, vector<16x128xbf16>
    %c0_1 = arith.constant 0 : index
    %c0_2 = arith.constant 0 : index
    %1 = vector.load %arg2[%c0_1, %c0_2] : memref<128x512xbf16, #tpu.memory_space<vmem>>, vector<128x512xbf16>
    %cst = arith.constant dense<0.000000e+00> : vector<16x512xf32>
    %2 = tpu.matmul %0, %1, %cst {dimension_numbers = #tpu.dot_dimension_numbers<[1], [0], [0], [1], [0, 0, 1, 1], [], []>} : vector<16x128xbf16>, vector<128x512xbf16>, vector<16x512xf32> -> vector<16x512xf32>
    %c0_3 = arith.constant 0 : index
    %c0_4 = arith.constant 0 : index
    %3 = vector.load %arg3[%c0_3, %c0_4] : memref<1x512xf32, #tpu.memory_space<vmem>>, vector<1x512xf32>
    %4 = vector.broadcast %3 : vector<1x512xf32> to vector<16x512xf32>
    %5 = arith.addf %2, %4 : vector<16x512xf32>
    %cst_5 = arith.constant 0.000000e+00 : f32
    %6 = vector.broadcast %cst_5 : f32 to vector<16x512xf32>
    %7 = arith.maximumf %5, %6 : vector<16x512xf32>
    %8 = arith.truncf %7 : vector<16x512xf32> to vector<16x512xbf16>
    %c0_6 = arith.constant 0 : index
    %c0_7 = arith.constant 0 : index
    %9 = vector.load %arg4[%c0_6, %c0_7] : memref<512x384xbf16, #tpu.memory_space<vmem>>, vector<512x384xbf16>
    %cst_8 = arith.constant dense<0.000000e+00> : vector<16x384xf32>
    %10 = tpu.matmul %8, %9, %cst_8 {dimension_numbers = #tpu.dot_dimension_numbers<[1], [0], [0], [1], [0, 0, 1, 1], [], []>} : vector<16x512xbf16>, vector<512x384xbf16>, vector<16x384xf32> -> vector<16x384xf32>
    %c0_9 = arith.constant 0 : index
    %c0_10 = arith.constant 0 : index
    %11 = vector.load %arg5[%c0_9, %c0_10] : memref<1x384xf32, #tpu.memory_space<vmem>>, vector<1x384xf32>
    %12 = vector.broadcast %11 : vector<1x384xf32> to vector<16x384xf32>
    %13 = arith.addf %10, %12 : vector<16x384xf32>
    %cst_11 = arith.constant 0.000000e+00 : f32
    %14 = vector.broadcast %cst_11 : f32 to vector<16x384xf32>
    %15 = arith.maximumf %13, %14 : vector<16x384xf32>
    %16 = arith.truncf %15 : vector<16x384xf32> to vector<16x384xbf16>
    %c0_12 = arith.constant 0 : index
    %c0_13 = arith.constant 0 : index
    %17 = vector.load %arg6[%c0_12, %c0_13] : memref<384x128xbf16, #tpu.memory_space<vmem>>, vector<384x128xbf16>
    %cst_14 = arith.constant dense<0.000000e+00> : vector<16x128xf32>
    %18 = tpu.matmul %16, %17, %cst_14 {dimension_numbers = #tpu.dot_dimension_numbers<[1], [0], [0], [1], [0, 0, 1, 1], [], []>} : vector<16x384xbf16>, vector<384x128xbf16>, vector<16x128xf32> -> vector<16x128xf32>
    %c0_15 = arith.constant 0 : index
    %c0_16 = arith.constant 0 : index
    %19 = vector.load %arg7[%c0_15, %c0_16] : memref<1x128xf32, #tpu.memory_space<vmem>>, vector<1x128xf32>
    %20 = vector.broadcast %19 : vector<1x128xf32> to vector<16x128xf32>
    %21 = arith.addf %18, %20 : vector<16x128xf32>
    %22 = math.tanh %21 : vector<16x128xf32>
    %cst_17 = arith.constant 2.000000e+00 : f32
    %23 = vector.broadcast %cst_17 : f32 to vector<16x128xf32>
    %24 = arith.mulf %23, %22 : vector<16x128xf32>
    %c0_18 = arith.constant 0 : index
    %c0_19 = arith.constant 0 : index
    %25 = vector.load %arg8[%c0_18, %c0_19] : memref<16x128xf32, #tpu.memory_space<vmem>>, vector<16x128xf32>
    tpu.vector_store %arg8[%c0_18, %c0_19], %24 {strides = array<i32>} : memref<16x128xf32, #tpu.memory_space<vmem>>, vector<16x128xf32>,
    return
  }
  func.func @transform_0(%arg0: i32) -> (i32, i32) {
    %c0_i32 = arith.constant 0 : i32
    %c0_i32_0 = arith.constant 0 : i32
    return %arg0, %c0_i32 : i32, i32
  }
  func.func @transform_1(%arg0: i32) -> (i32, i32) {
    %c0_i32 = arith.constant 0 : i32
    %c0_i32_0 = arith.constant 0 : i32
    %c0_i32_1 = arith.constant 0 : i32
    return %c0_i32, %c0_i32_0 : i32, i32
  }
  func.func @transform_2(%arg0: i32) -> (i32, i32) {
    %c0_i32 = arith.constant 0 : i32
    %c0_i32_0 = arith.constant 0 : i32
    %c0_i32_1 = arith.constant 0 : i32
    return %c0_i32, %c0_i32_0 : i32, i32
  }
  func.func @transform_3(%arg0: i32) -> (i32, i32) {
    %c0_i32 = arith.constant 0 : i32
    %c0_i32_0 = arith.constant 0 : i32
    %c0_i32_1 = arith.constant 0 : i32
    return %c0_i32, %c0_i32_0 : i32, i32
  }
  func.func @transform_4(%arg0: i32) -> (i32, i32) {
    %c0_i32 = arith.constant 0 : i32
    %c0_i32_0 = arith.constant 0 : i32
    %c0_i32_1 = arith.constant 0 : i32
    return %c0_i32, %c0_i32_0 : i32, i32
  }
  func.func @transform_5(%arg0: i32) -> (i32, i32) {
    %c0_i32 = arith.constant 0 : i32
    %c0_i32_0 = arith.constant 0 : i32
    %c0_i32_1 = arith.constant 0 : i32
    return %c0_i32, %c0_i32_0 : i32, i32
  }
  func.func @transform_6(%arg0: i32) -> (i32, i32) {
    %c0_i32 = arith.constant 0 : i32
    %c0_i32_0 = arith.constant 0 : i32
    %c0_i32_1 = arith.constant 0 : i32
    return %c0_i32, %c0_i32_0 : i32, i32
  }
  func.func @transform_7(%arg0: i32) -> (i32, i32) {
    %c0_i32 = arith.constant 0 : i32
    %c0_i32_0 = arith.constant 0 : i32
    return %arg0, %c0_i32 : i32, i32
  }
}

</mosaic_0001>

<bundles_post_ra>
// kernel: tpu_custom_call.1
= control target key start
LH: loop header
LB: loop body
LE: loop exit
PB: predicated region body
PF: predicated region fallthrough
CT: control target
= control target key end

     0   :  { %12 = vsyncpa [#allocation3], 0  ;;  %s2510_s0 = inlined_call_operand.hbm [shape: bf16[16,128], index: 0, kind: input, shape index: {}]   ;;  %s2511_s1 = inlined_call_operand.hbm [shape: bf16[128,512], index: 1, kind: input, shape index: {}]   ;;  %s2512_s2 = inlined_call_operand.hbm [shape: f32[1,512], index: 2, kind: input, shape index: {}]   ;;  %s2513_s3 = inlined_call_operand.hbm [shape: bf16[512,384], index: 3, kind: input, shape index: {}]   ;;  %s2514_s4 = inlined_call_operand.vmem [shape: f32[1,384], index: 4, kind: input, shape index: {}]   ;;  %s2515_s5 = inlined_call_operand.hbm [shape: bf16[384,128], index: 5, kind: input, shape index: {}]   ;;  %s2516_s6 = inlined_call_operand.vmem [shape: f32[1,128], index: 6, kind: input, shape index: {}]   ;;  %s2517_s7 = inlined_call_operand.hbm [shape: f32[16,128], index: 7, kind: output, shape index: {}]  }
   0x1   :  { %13 = vsyncpa [#allocation6], 0 }
   0x2   :  { %14 = vsyncpa [#allocation9], 0  ;;  %s33_s26 = sshll.u32 %s2511_s1, 4  ;;  %s34_s26 = int_to_ptr.hbm [resolvable:$true] %s33_s26 }
   0x3   :  { %15 = vsyncpa [#allocation4], 0  ;;  %s2407_s27 = smov [#allocation5]   ;;  %s57_s8 = sshll.u32 %s2513_s3, 4  ;;  %s58_s8 = int_to_ptr.hbm [resolvable:$true] %s57_s8 }
   0x4   :  { %s35_s28 = sshll.u32 %s2407_s27, 4  ;;  %s2408_s9 = smov 256   ;;  %s36_s28 = int_to_ptr.vmem [resolvable:$true] %s35_s28 }
   0x5   :  { %s2409_s10 = smov 16   ;;  %s2410_s11 = smov [#allocation8]  }
   0x6   :  { %41 = dma.hbm_to_vmem [thread:$0]  %s34_s26, 4096, %s36_s28, [#allocation6], %s2408_s9, %s2408_s9, %s2409_s10  }
   0x7   :  { %s59_s12 = sshll.u32 %s2410_s11, 4  ;;  %s2411_s13 = smov 192   ;;  %s60_s12 = int_to_ptr.vmem [resolvable:$true] %s59_s12 }
   0x8   :  { %s2412_s14 = smov 12   ;;  %s20_s16 = sshll.u32 %s2510_s0, 4  ;;  %s21_s16 = int_to_ptr.hbm [resolvable:$true] %s20_s16 }
   0x9   :  { %65 = dma.hbm_to_vmem [thread:$0]  %s58_s8, 12288, %s60_s12, [#allocation9], %s2411_s13, %s2411_s13, %s2412_s14  }
   0xa   :  { %s2413_s17 = smov [#allocation2]   ;;  %s47_s20 = sshll.u32 %s2512_s2, 4  ;;  %s48_s20 = int_to_ptr.hbm [resolvable:$true] %s47_s20 }
   0xb   :  { %s22_s18 = sshll.u32 %s2413_s17, 4  ;;  %s2414_s21 = smov 64   ;;  %s23_s18 = int_to_ptr.vmem [resolvable:$true] %s22_s18 }
   0xc   :  { %s2415_s22 = smov 4   ;;  %s2416_s23 = smov [#allocation7]  }
   0xd   :  { %28 = dma.hbm_to_vmem [thread:$0]  %s21_s16, 128, %s23_s18, [#allocation3], %s2414_s21, %s2414_s21, %s2415_s22  }
   0xe   :  { %s49_s24 = sshll.u32 %s2416_s23, 4  ;;  %s72_s27 = sshll.u32 %s2515_s5, 4  ;;  %s50_s24 = int_to_ptr.vmem [resolvable:$true] %s49_s24  ;;  %s73_s27 = int_to_ptr.hbm [resolvable:$true] %s72_s27 }
   0xf   :  { %52 = dma.hbm_to_vmem [thread:$0]  %s48_s20, 64, %s50_s24, [#allocation6]  }
  0x10   :  { %s2417_s0 = smov [#allocation10]  }
  0x11   :  { %s74_s28 = sshll.u32 %s2417_s0, 4  ;;  %s75_s28 = int_to_ptr.vmem [resolvable:$true] %s74_s28 }
  0x12   :  { %80 = dma.hbm_to_vmem [thread:$0]  %s73_s27, 3072, %s75_s28, [#allocation9], %s2414_s21, %s2414_s21, %s2415_s22  }
  0x13   :  { %2399 = dma.done.wait [#allocation3], 128  }
  0x14   :  { %2400 = vsyncadd [#allocation3], 4294967168 }
  0x15   :  { %2401 = dma.done.wait [#allocation6], 4160  }
  0x16   :  { %2402 = vsyncadd [#allocation6], 4294963136 }
  0x17   :  { %2403 = dma.done.wait [#allocation9], 15360  }
  0x18   :  { %2404 = vsyncadd [#allocation9], 4294951936  ;;  %v1589_v0 = vld [vmem:[#allocation5 + $0xe0] sm:$0xf]  ;;  %v2114_v1 = vld [vmem:[#allocation5 + $0xec] sm:$0xf0] }
  0x19   :  { %v2112_v2 = vld [vmem:[#allocation5 + $0xe4] sm:$0xf]  ;;  %v1590_v3 = vor.u32 %v2114_v1, %v1589_v0  ;;  %v1591_v4 = vld [vmem:[#allocation5 + $0xf0] sm:$0xf0]  ;;  %v1597_v5 = vld [vmem:[#allocation5 + $0xe8] sm:$0xf] }
  0x1a   :  { %v2115_v6 = vld [vmem:[#allocation5 + $0xf4] sm:$0xf0]  ;;  %v1594_v7 = vor.u32 %v2112_v2, %v1591_v4  ;;  %v2113_v9 = vld [vmem:[#allocation5 + $0xec] sm:$0xf]  ;;  %v1599_v10 = vld [vmem:[#allocation5 + $0xf8] sm:$0xf0] }
  0x1b   :  { %v1598_v8 = vor.u32 %v2115_v6, %v1597_v5  ;;  %v1573_v11 = vld [vmem:[#allocation5 + $0xc0] sm:$0xf]  ;;  %313 = vmatpush.bf16.msra.mxu0 %v1590_v3  ;;  %v1602_v12 = vor.u32 %v2113_v9, %v1599_v10  ;;  %v2110_v13 = vld [vmem:[#allocation5 + $0xcc] sm:$0xf0]  ;;  %v2108_v14 = vld [vmem:[#allocation5 + $0xc4] sm:$0xf] }
  0x1c   :  { %v1575_v15 = vld [vmem:[#allocation5 + $0xd0] sm:$0xf0]  ;;  %327 = vmatpush.bf16.msra.mxu1 %v1594_v7  ;;  %v1574_v16 = vor.u32 %v2110_v13, %v1573_v11  ;;  %v1581_v18 = vld [vmem:[#allocation5 + $0xc8] sm:$0xf]  ;;  %v2111_v19 = vld [vmem:[#allocation5 + $0xd4] sm:$0xf0] }
  0x1d   :  { %341 = vmatpush.bf16.msra.mxu2 %v1598_v8  ;;  %v1578_v17 = vor.u32 %v2108_v14, %v1575_v15  ;;  %v2109_v20 = vld [vmem:[#allocation5 + $0xcc] sm:$0xf]  ;;  %355 = vmatpush.bf16.msra.mxu3 %v1602_v12  ;;  %v1582_v21 = vor.u32 %v2111_v19, %v1581_v18  ;;  %v1583_v22 = vld [vmem:[#allocation5 + $0xd8] sm:$0xf0]  ;;  %v1557_v23 = vld [vmem:[#allocation5 + $0xa0] sm:$0xf] }
  0x1e   :  { %v2106_v24 = vld [vmem:[#allocation5 + $0xac] sm:$0xf0]  ;;  %v1586_v25 = vor.u32 %v2109_v20, %v1583_v22  ;;  %v2104_v26 = vld [vmem:[#allocation5 + $0xa4] sm:$0xf]  ;;  %v1559_v27 = vld [vmem:[#allocation5 + $0xb0] sm:$0xf0] }
  0x1f   :  { %v1565_v28 = vld [vmem:[#allocation5 + $0xa8] sm:$0xf]  ;;  %314 = vmatpush.bf16.msra.mxu0 %v1574_v16  ;;  %v1558_v29 = vor.u32 %v2106_v24, %v1557_v23  ;;  %v2107_v30 = vld [vmem:[#allocation5 + $0xb4] sm:$0xf0]  ;;  %v2105_v31 = vld [vmem:[#allocation5 + $0xac] sm:$0xf]  ;;  %v1562_v33 = vor.u32 %v2104_v26, %v1559_v27 }
  0x20   :  { %v1567_v32 = vld [vmem:[#allocation5 + $0xb8] sm:$0xf0]  ;;  %328 = vmatpush.bf16.msra.mxu1 %v1578_v17  ;;  %v1566_v34 = vor.u32 %v2107_v30, %v1565_v28  ;;  %v1541_v35 = vld [vmem:[#allocation5 + $0x80] sm:$0xf]  ;;  %v2102_v36 = vld [vmem:[#allocation5 + $0x8c] sm:$0xf0] }
  0x21   :  { %342 = vmatpush.bf16.msra.mxu2 %v1582_v21  ;;  %v2100_v37 = vld [vmem:[#allocation5 + $0x84] sm:$0xf]  ;;  %356 = vmatpush.bf16.msra.mxu3 %v1586_v25  ;;  %v1570_v38 = vor.u32 %v2105_v31, %v1567_v32  ;;  %v1543_v39 = vld [vmem:[#allocation5 + $0x90] sm:$0xf0]  ;;  %v1549_v40 = vld [vmem:[#allocation5 + $0x88] sm:$0xf]  ;;  %v1542_v44 = vor.u32 %v2102_v36, %v1541_v35 }
  0x22   :  { %v2103_v41 = vld [vmem:[#allocation5 + $0x94] sm:$0xf0]  ;;  %v2101_v42 = vld [vmem:[#allocation5 + $0x8c] sm:$0xf]  ;;  %v1551_v43 = vld [vmem:[#allocation5 + $0x98] sm:$0xf0]  ;;  %v1546_v45 = vor.u32 %v2100_v37, %v1543_v39 }
  0x23   :  { %315 = vmatpush.bf16.msra.mxu0 %v1558_v29  ;;  %v1550_v46 = vor.u32 %v2103_v41, %v1549_v40  ;;  %v1525_v47 = vld [vmem:[#allocation5 + $0x60] sm:$0xf]  ;;  %v2098_v48 = vld [vmem:[#allocation5 + $0x6c] sm:$0xf0]  ;;  %v2096_v49 = vld [vmem:[#allocation5 + $0x64] sm:$0xf]  ;;  %v1554_v50 = vor.u32 %v2101_v42, %v1551_v43 }
  0x24   :  { %329 = vmatpush.bf16.msra.mxu1 %v1562_v33  ;;  %v1527_v51 = vld [vmem:[#allocation5 + $0x70] sm:$0xf0]  ;;  %v1533_v52 = vld [vmem:[#allocation5 + $0x68] sm:$0xf]  ;;  %v2099_v53 = vld [vmem:[#allocation5 + $0x74] sm:$0xf0]  ;;  %v1526_v56 = vor.u32 %v2098_v48, %v1525_v47 }
  0x25   :  { %343 = vmatpush.bf16.msra.mxu2 %v1566_v34  ;;  %357 = vmatpush.bf16.msra.mxu3 %v1570_v38  ;;  %v2097_v54 = vld [vmem:[#allocation5 + $0x6c] sm:$0xf]  ;;  %v1535_v55 = vld [vmem:[#allocation5 + $0x78] sm:$0xf0]  ;;  %v1530_v57 = vor.u32 %v2096_v49, %v1527_v51  ;;  %v1534_v58 = vor.u32 %v2099_v53, %v1533_v52  ;;  %v1509_v59 = vld [vmem:[#allocation5 + $0x40] sm:$0xf] }
  0x26   :  { %v2094_v60 = vld [vmem:[#allocation5 + $0x4c] sm:$0xf0]  ;;  %v2092_v61 = vld [vmem:[#allocation5 + $0x44] sm:$0xf]  ;;  %v1538_v62 = vor.u32 %v2097_v54, %v1535_v55  ;;  %v1511_v63 = vld [vmem:[#allocation5 + $0x50] sm:$0xf0] }
  0x27   :  { %316 = vmatpush.bf16.msra.mxu0 %v1542_v44  ;;  %v1517_v0 = vld [vmem:[#allocation5 + $0x48] sm:$0xf]  ;;  %v2095_v1 = vld [vmem:[#allocation5 + $0x54] sm:$0xf0]  ;;  %v2093_v2 = vld [vmem:[#allocation5 + $0x4c] sm:$0xf]  ;;  %v1510_v4 = vor.u32 %v2094_v60, %v1509_v59  ;;  %v1514_v5 = vor.u32 %v2092_v61, %v1511_v63 }
  0x28   :  { %330 = vmatpush.bf16.msra.mxu1 %v1546_v45  ;;  %v1519_v3 = vld [vmem:[#allocation5 + $0x58] sm:$0xf0]  ;;  %v1518_v6 = vor.u32 %v2095_v1, %v1517_v0  ;;  %v1493_v7 = vld [vmem:[#allocation5 + $0x20] sm:$0xf]  ;;  %v2090_v8 = vld [vmem:[#allocation5 + $0x2c] sm:$0xf0] }
  0x29   :  { %344 = vmatpush.bf16.msra.mxu2 %v1550_v46  ;;  %358 = vmatpush.bf16.msra.mxu3 %v1554_v50  ;;  %v2088_v9 = vld [vmem:[#allocation5 + $0x24] sm:$0xf]  ;;  %v1522_v10 = vor.u32 %v2093_v2, %v1519_v3  ;;  %v1495_v11 = vld [vmem:[#allocation5 + $0x30] sm:$0xf0]  ;;  %v1501_v12 = vld [vmem:[#allocation5 + $0x28] sm:$0xf]  ;;  %v1494_v16 = vor.u32 %v2090_v8, %v1493_v7 }
  0x2a   :  { %v2091_v13 = vld [vmem:[#allocation5 + $0x34] sm:$0xf0]  ;;  %v2089_v14 = vld [vmem:[#allocation5 + $0x2c] sm:$0xf]  ;;  %v1503_v15 = vld [vmem:[#allocation5 + $0x38] sm:$0xf0]  ;;  %v1498_v18 = vor.u32 %v2088_v9, %v1495_v11 }
  0x2b   :  { %317 = vmatpush.bf16.msra.mxu0 %v1526_v56  ;;  %v1477_v17 = vld [vmem:[#allocation5] sm:$0xf]  ;;  %v1502_v19 = vor.u32 %v2091_v13, %v1501_v12  ;;  %v2086_v20 = vld [vmem:[#allocation5 + $0xc] sm:$0xf0]  ;;  %v2084_v21 = vld [vmem:[#allocation5 + $0x4] sm:$0xf]  ;;  %v1506_v23 = vor.u32 %v2089_v14, %v1503_v15 }
  0x2c   :  { %331 = vmatpush.bf16.msra.mxu1 %v1530_v57  ;;  %v1479_v22 = vld [vmem:[#allocation5 + $0x10] sm:$0xf0]  ;;  %v1485_v24 = vld [vmem:[#allocation5 + $0x8] sm:$0xf]  ;;  %v2087_v25 = vld [vmem:[#allocation5 + $0x14] sm:$0xf0]  ;;  %v1478_v30 = vor.u32 %v2086_v20, %v1477_v17 }
  0x2d   :  { %345 = vmatpush.bf16.msra.mxu2 %v1534_v58  ;;  %359 = vmatpush.bf16.msra.mxu3 %v1538_v62  ;;  %v2085_v26 = vld [vmem:[#allocation5 + $0xc] sm:$0xf]  ;;  %v1487_v27 = vld [vmem:[#allocation5 + $0x18] sm:$0xf0]  ;;  %v2138_v29 = vld [vmem:[#allocation8 + $0xb0] sm:$0xf0]  ;;  %v1482_v33 = vor.u32 %v2084_v21, %v1479_v22  ;;  %v1486_v34 = vor.u32 %v2087_v25, %v1485_v24 }
  0x2e   :  { %v1689_v28 = vld [vmem:[#allocation8 + $0xa8] sm:$0xf]  ;;  %v2162_v32 = vld [vmem:[#allocation8 + $0x170] sm:$0xf0]  ;;  %v1490_v36 = vor.u32 %v2085_v26, %v1487_v27  ;;  %v1677_v38 = vld [vmem:[#allocation8 + $0x90] sm:$0xf] }
  0x2f   :  { %318 = vmatpush.bf16.msra.mxu0 %v1510_v4  ;;  %v1785_v31 = vld [vmem:[#allocation8 + $0x168] sm:$0xf]  ;;  %v2083_v35 = vld [vmem:[#allocation2] sm:$0xff]  ;;  %v1690_v37 = vor.u32 %v2138_v29, %v1689_v28  ;;  %v2135_v42 = vld [vmem:[#allocation8 + $0x98] sm:$0xf0]  ;;  %s2418_s30 = smov [#allocation11]  }
  0x30   :  { %332 = vmatpush.bf16.msra.mxu1 %v1514_v5  ;;  %v1881_v39 = vld [vmem:[#allocation8 + $0x228] sm:$0xf]  ;;  %v2186_v40 = vld [vmem:[#allocation8 + $0x230] sm:$0xf0]  ;;  %v1786_v41 = vor.u32 %v2162_v32, %v1785_v31  ;;  %v1773_v45 = vld [vmem:[#allocation8 + $0x150] sm:$0xf]  ;;  %v1678_v48 = vor.u32 %v2135_v42, %v1677_v38 }
  0x31   :  { %346 = vmatpush.bf16.msra.mxu2 %v1518_v6  ;;  %360 = vmatpush.bf16.msra.mxu3 %v1522_v10  ;;  %v1977_v43 = vld [vmem:[#allocation8 + $0x2e8] sm:$0xf]  ;;  %v2210_v44 = vld [vmem:[#allocation8 + $0x2f0] sm:$0xf0]  ;;  %v2159_v46 = vld [vmem:[#allocation8 + $0x158] sm:$0xf0]  ;;  %v1882_v47 = vor.u32 %v2186_v40, %v1881_v39 }
  0x32   :  { %v1978_v49 = vor.u32 %v2210_v44, %v1977_v43  ;;  %v1665_v50 = vld [vmem:[#allocation8 + $0x78] sm:$0xf]  ;;  %v1869_v51 = vld [vmem:[#allocation8 + $0x210] sm:$0xf]  ;;  %v2183_v52 = vld [vmem:[#allocation8 + $0x218] sm:$0xf0]  ;;  %v1774_v53 = vor.u32 %v2159_v46, %v1773_v45 }
  0x33   :  { %319 = vmatpush.bf16.msra.mxu0 %v1494_v16  ;;  %v2132_v54 = vld [vmem:[#allocation8 + $0x80] sm:$0xf0]  ;;  %v1965_v55 = vld [vmem:[#allocation8 + $0x2d0] sm:$0xf]  ;;  %v2207_v56 = vld [vmem:[#allocation8 + $0x2d8] sm:$0xf0]  ;;  %v1870_v59 = vor.u32 %v2183_v52, %v1869_v51 }
  0x34   :  { %333 = vmatpush.bf16.msra.mxu1 %v1498_v18  ;;  %v1761_v57 = vld [vmem:[#allocation8 + $0x138] sm:$0xf]  ;;  %v2156_v58 = vld [vmem:[#allocation8 + $0x140] sm:$0xf0]  ;;  %v1666_v60 = vor.u32 %v2132_v54, %v1665_v50  ;;  %v1966_v61 = vor.u32 %v2207_v56, %v1965_v55  ;;  %v1653_v62 = vld [vmem:[#allocation8 + $0x60] sm:$0xf] }
  0x35   :  { %347 = vmatpush.bf16.msra.mxu2 %v1502_v19  ;;  %361 = vmatpush.bf16.msra.mxu3 %v1506_v23  ;;  %v1857_v63 = vld [vmem:[#allocation8 + $0x1f8] sm:$0xf]  ;;  %v2180_v0 = vld [vmem:[#allocation8 + $0x200] sm:$0xf0]  ;;  %v1762_v1 = vor.u32 %v2156_v58, %v1761_v57  ;;  %v2129_v2 = vld [vmem:[#allocation8 + $0x68] sm:$0xf0] }
  0x36   :  { %v1953_v3 = vld [vmem:[#allocation8 + $0x2b8] sm:$0xf]  ;;  %v2204_v4 = vld [vmem:[#allocation8 + $0x2c0] sm:$0xf0]  ;;  %v1749_v5 = vld [vmem:[#allocation8 + $0x120] sm:$0xf]  ;;  %v1858_v7 = vor.u32 %v2180_v0, %v1857_v63  ;;  %v1654_v8 = vor.u32 %v2129_v2, %v1653_v62 }
  0x37   :  { %320 = vmatpush.bf16.msra.mxu0 %v1478_v30  ;;  %v2153_v6 = vld [vmem:[#allocation8 + $0x128] sm:$0xf0]  ;;  %v1954_v9 = vor.u32 %v2204_v4, %v1953_v3  ;;  %v1641_v10 = vld [vmem:[#allocation8 + $0x48] sm:$0xf]  ;;  %v1845_v11 = vld [vmem:[#allocation8 + $0x1e0] sm:$0xf] }
  0x38   :  { %334 = vmatpush.bf16.msra.mxu1 %v1482_v33  ;;  %v2177_v12 = vld [vmem:[#allocation8 + $0x1e8] sm:$0xf0]  ;;  %v1750_v13 = vor.u32 %v2153_v6, %v1749_v5  ;;  %v2126_v14 = vld [vmem:[#allocation8 + $0x50] sm:$0xf0]  ;;  %v1941_v15 = vld [vmem:[#allocation8 + $0x2a0] sm:$0xf] }
  0x39   :  { %348 = vmatpush.bf16.msra.mxu2 %v1486_v34  ;;  %362 = vmatpush.bf16.msra.mxu3 %v1490_v36  ;;  %v2201_v16 = vld [vmem:[#allocation8 + $0x2a8] sm:$0xf0]  ;;  %v1737_v17 = vld [vmem:[#allocation8 + $0x108] sm:$0xf]  ;;  %v2150_v18 = vld [vmem:[#allocation8 + $0x110] sm:$0xf0]  ;;  %v1846_v19 = vor.u32 %v2177_v12, %v1845_v11  ;;  %v1642_v20 = vor.u32 %v2126_v14, %v1641_v10 }
  0x3a   :  { %321 = vmatmul.bf16.vlgmr.msra.gmra.mxu0 %v2083_v35  ;;  %v1942_v21 = vor.u32 %v2201_v16, %v1941_v15  ;;  %v1629_v22 = vld [vmem:[#allocation8 + $0x30] sm:$0xf]  ;;  %v1833_v23 = vld [vmem:[#allocation8 + $0x1c8] sm:$0xf]  ;;  %v2174_v24 = vld [vmem:[#allocation8 + $0x1d0] sm:$0xf0]  ;;  %v1738_v25 = vor.u32 %v2150_v18, %v1737_v17 }
  0x3b   :  { %1029 = vmatpush.bf16.msrb.mxu0 %v1690_v37  ;;  %335 = vmatmul.bf16.vlgmr.msra.gmra.mxu1 %v2083_v35  ;;  %v2123_v26 = vld [vmem:[#allocation8 + $0x38] sm:$0xf0]  ;;  %v1929_v27 = vld [vmem:[#allocation8 + $0x288] sm:$0xf]  ;;  %v2198_v28 = vld [vmem:[#allocation8 + $0x290] sm:$0xf0]  ;;  %v1834_v31 = vor.u32 %v2174_v24, %v1833_v23 }
  0x3c   :  { %1043 = vmatpush.bf16.msrb.mxu1 %v1786_v41  ;;  %349 = vmatmul.bf16.vlgmr.msra.gmra.mxu2 %v2083_v35  ;;  %v1725_v29 = vld [vmem:[#allocation8 + $0xf0] sm:$0xf]  ;;  %v2147_v30 = vld [vmem:[#allocation8 + $0xf8] sm:$0xf0]  ;;  %v1630_v32 = vor.u32 %v2123_v26, %v1629_v22  ;;  %v1930_v33 = vor.u32 %v2198_v28, %v1929_v27  ;;  %v1617_v34 = vld [vmem:[#allocation8 + $0x18] sm:$0xf] }
  0x3d   :  { %363 = vmatmul.bf16.vlgmr.msra.gmra.mxu3 %v2083_v35  ;;  %1057 = vmatpush.bf16.msrb.mxu2 %v1882_v47  ;;  %v1821_v35 = vld [vmem:[#allocation8 + $0x1b0] sm:$0xf]  ;;  %v2171_v36 = vld [vmem:[#allocation8 + $0x1b8] sm:$0xf0]  ;;  %v1726_v37 = vor.u32 %v2147_v30, %v1725_v29  ;;  %v2120_v38 = vld [vmem:[#allocation8 + $0x20] sm:$0xf0] }
  0x3e   :  { %1071 = vmatpush.bf16.msrb.mxu3 %v1978_v49  ;;  %v1917_v39 = vld [vmem:[#allocation8 + $0x270] sm:$0xf]  ;;  %v2195_v40 = vld [vmem:[#allocation8 + $0x278] sm:$0xf0]  ;;  %v1713_v41 = vld [vmem:[#allocation8 + $0xd8] sm:$0xf]  ;;  %v1822_v43 = vor.u32 %v2171_v36, %v1821_v35  ;;  %v1618_v45 = vor.u32 %v2120_v38, %v1617_v34 }
  0x3f   :  { %1030 = vmatpush.bf16.msrb.mxu0 %v1678_v48  ;;  %v2144_v42 = vld [vmem:[#allocation8 + $0xe0] sm:$0xf0]  ;;  %v1605_v44 = vld [vmem:[#allocation8] sm:$0xf]  ;;  %v1918_v46 = vor.u32 %v2195_v40, %v1917_v39  ;;  %v2117_v47 = vld [vmem:[#allocation8 + $0x8] sm:$0xf0] }
  0x40   :  { %1044 = vmatpush.bf16.msrb.mxu1 %v1774_v53  ;;  %v1809_v48 = vld [vmem:[#allocation8 + $0x198] sm:$0xf]  ;;  %v2168_v49 = vld [vmem:[#allocation8 + $0x1a0] sm:$0xf0]  ;;  %v1714_v50 = vor.u32 %v2144_v42, %v1713_v41  ;;  %v1701_v51 = vld [vmem:[#allocation8 + $0xc0] sm:$0xf] }
  0x41   :  { %1058 = vmatpush.bf16.msrb.mxu2 %v1870_v59  ;;  %v1905_v52 = vld [vmem:[#allocation8 + $0x258] sm:$0xf]  ;;  %v2192_v53 = vld [vmem:[#allocation8 + $0x260] sm:$0xf0]  ;;  %v2141_v54 = vld [vmem:[#allocation8 + $0xc8] sm:$0xf0]  ;;  %v1810_v59 = vor.u32 %v2168_v49, %v1809_v48 }
  0x42   :  { %1072 = vmatpush.bf16.msrb.mxu3 %v1966_v61  ;;  %v2137_v55 = vld [vmem:[#allocation8 + $0xac] sm:$0xf]  ;;  %v1691_v56 = vld [vmem:[#allocation8 + $0xb4] sm:$0xf0]  ;;  %v1906_v61 = vor.u32 %v2192_v53, %v1905_v52  ;;  %v2134_v62 = vld [vmem:[#allocation8 + $0x94] sm:$0xf]  ;;  %v1702_v2 = vor.u32 %v2141_v54, %v1701_v51 }
  0x43   :  { %1031 = vmatpush.bf16.msrb.mxu0 %v1666_v60  ;;  %v2161_v57 = vld [vmem:[#allocation8 + $0x16c] sm:$0xf]  ;;  %v1787_v58 = vld [vmem:[#allocation8 + $0x174] sm:$0xf0]  ;;  %v1606_v60 = vor.u32 %v2117_v47, %v1605_v44  ;;  %v1797_v63 = vld [vmem:[#allocation8 + $0x180] sm:$0xf]  ;;  %v1694_v3 = vor.u32 %v2137_v55, %v1691_v56 }
  0x44   :  { %1045 = vmatpush.bf16.msrb.mxu1 %v1762_v1  ;;  %v2165_v0 = vld [vmem:[#allocation8 + $0x188] sm:$0xf0]  ;;  %v1893_v1 = vld [vmem:[#allocation8 + $0x240] sm:$0xf]  ;;  %v1883_v6 = vld [vmem:[#allocation8 + $0x234] sm:$0xf0] }
  0x45   :  { %1059 = vmatpush.bf16.msrb.mxu2 %v1858_v7  ;;  %v2189_v4 = vld [vmem:[#allocation8 + $0x248] sm:$0xf0]  ;;  %v1790_v7 = vor.u32 %v2161_v57, %v1787_v58  ;;  %v1979_v10 = vld [vmem:[#allocation8 + $0x2f4] sm:$0xf0]  ;;  %v2158_v11 = vld [vmem:[#allocation8 + $0x154] sm:$0xf] }
  0x46   :  { %1073 = vmatpush.bf16.msrb.mxu3 %v1954_v9  ;;  %v2185_v5 = vld [vmem:[#allocation8 + $0x22c] sm:$0xf]  ;;  %v1775_v12 = vld [vmem:[#allocation8 + $0x15c] sm:$0xf0]  ;;  %v1894_v14 = vor.u32 %v2189_v4, %v1893_v1  ;;  %v2131_v18 = vld [vmem:[#allocation8 + $0x7c] sm:$0xf] }
  0x47   :  { %1032 = vmatpush.bf16.msrb.mxu0 %v1654_v8  ;;  %v1679_v8 = vld [vmem:[#allocation8 + $0x9c] sm:$0xf0]  ;;  %v2209_v9 = vld [vmem:[#allocation8 + $0x2ec] sm:$0xf]  ;;  %v1886_v15 = vor.u32 %v2185_v5, %v1883_v6  ;;  %v1667_v22 = vld [vmem:[#allocation8 + $0x84] sm:$0xf0] }
  0x48   :  { %1046 = vmatpush.bf16.msrb.mxu1 %v1750_v13  ;;  %v1798_v13 = vor.u32 %v2165_v0, %v1797_v63  ;;  %v1682_v16 = vor.u32 %v2134_v62, %v1679_v8  ;;  %v1982_v17 = vor.u32 %v2209_v9, %v1979_v10  ;;  %v2206_v23 = vld [vmem:[#allocation8 + $0x2d4] sm:$0xf]  ;;  %v1967_v24 = vld [vmem:[#allocation8 + $0x2dc] sm:$0xf0]  ;;  %v1763_v26 = vld [vmem:[#allocation8 + $0x144] sm:$0xf0]  ;;  %v1670_v28 = vor.u32 %v2131_v18, %v1667_v22 }
  0x49   :  { %1060 = vmatpush.bf16.msrb.mxu2 %v1846_v19  ;;  %v2182_v19 = vld [vmem:[#allocation8 + $0x214] sm:$0xf]  ;;  %v1970_v29 = vor.u32 %v2206_v23, %v1967_v24  ;;  %v1751_v34 = vld [vmem:[#allocation8 + $0x12c] sm:$0xf0]  ;;  %v1859_v38 = vld [vmem:[#allocation8 + $0x204] sm:$0xf0] }
  0x4a   :  { %1074 = vmatpush.bf16.msrb.mxu3 %v1942_v21  ;;  %v1778_v21 = vor.u32 %v2158_v11, %v1775_v12  ;;  %v2203_v39 = vld [vmem:[#allocation8 + $0x2bc] sm:$0xf]  ;;  %v1955_v41 = vld [vmem:[#allocation8 + $0x2c4] sm:$0xf0]  ;;  %v1643_v44 = vld [vmem:[#allocation8 + $0x54] sm:$0xf0] }
  0x4b   :  { %1033 = vmatpush.bf16.msrb.mxu0 %v1642_v20  ;;  %v1871_v20 = vld [vmem:[#allocation8 + $0x21c] sm:$0xf0]  ;;  %v1958_v42 = vor.u32 %v2203_v39, %v1955_v41  ;;  %v1739_v47 = vld [vmem:[#allocation8 + $0x114] sm:$0xf0]  ;;  %v2176_v49 = vld [vmem:[#allocation8 + $0x1e4] sm:$0xf] }
  0x4c   :  { %1047 = vmatpush.bf16.msrb.mxu1 %v1738_v25  ;;  %v2155_v25 = vld [vmem:[#allocation8 + $0x13c] sm:$0xf]  ;;  %v1874_v27 = vor.u32 %v2182_v19, %v1871_v20  ;;  %v2200_v51 = vld [vmem:[#allocation8 + $0x2a4] sm:$0xf]  ;;  %v1943_v53 = vld [vmem:[#allocation8 + $0x2ac] sm:$0xf0] }
  0x4d   :  { %1061 = vmatpush.bf16.msrb.mxu2 %v1834_v31  ;;  %v1766_v30 = vor.u32 %v2155_v25, %v1763_v26  ;;  %v2128_v31 = vld [vmem:[#allocation8 + $0x64] sm:$0xf]  ;;  %v1946_v54 = vor.u32 %v2200_v51, %v1943_v53  ;;  %v2122_v55 = vld [vmem:[#allocation8 + $0x34] sm:$0xf]  ;;  %v1631_v56 = vld [vmem:[#allocation8 + $0x3c] sm:$0xf0] }
  0x4e   :  { %1075 = vmatpush.bf16.msrb.mxu3 %v1930_v33  ;;  %v2152_v33 = vld [vmem:[#allocation8 + $0x124] sm:$0xf]  ;;  %v2146_v57 = vld [vmem:[#allocation8 + $0xf4] sm:$0xf]  ;;  %v1634_v58 = vor.u32 %v2122_v55, %v1631_v56  ;;  %v1835_v62 = vld [vmem:[#allocation8 + $0x1d4] sm:$0xf0] }
  0x4f   :  { %1034 = vmatpush.bf16.msrb.mxu0 %v1630_v32  ;;  %v1655_v32 = vld [vmem:[#allocation8 + $0x6c] sm:$0xf0]  ;;  %v1754_v36 = vor.u32 %v2152_v33, %v1751_v34  ;;  %v2197_v63 = vld [vmem:[#allocation8 + $0x28c] sm:$0xf]  ;;  %v1931_v1 = vld [vmem:[#allocation8 + $0x294] sm:$0xf0] }
  0x50   :  { %1048 = vmatpush.bf16.msrb.mxu1 %v1726_v37  ;;  %v1658_v35 = vor.u32 %v2128_v31, %v1655_v32  ;;  %v2179_v37 = vld [vmem:[#allocation8 + $0x1fc] sm:$0xf]  ;;  %v1619_v4 = vld [vmem:[#allocation8 + $0x24] sm:$0xf0]  ;;  %v2170_v9 = vld [vmem:[#allocation8 + $0x1b4] sm:$0xf] }
  0x51   :  { %1062 = vmatpush.bf16.msrb.mxu2 %v1822_v43  ;;  %v1862_v40 = vor.u32 %v2179_v37, %v1859_v38  ;;  %v2125_v43 = vld [vmem:[#allocation8 + $0x4c] sm:$0xf]  ;;  %v2143_v5 = vld [vmem:[#allocation8 + $0xdc] sm:$0xf]  ;;  %v1823_v10 = vld [vmem:[#allocation8 + $0x1bc] sm:$0xf0] }
  0x52   :  { %1076 = vmatpush.bf16.msrb.mxu3 %v1918_v46  ;;  %v1646_v46 = vor.u32 %v2125_v43, %v1643_v44  ;;  %v2194_v11 = vld [vmem:[#allocation8 + $0x274] sm:$0xf]  ;;  %v1826_v12 = vor.u32 %v2170_v9, %v1823_v10  ;;  %v1703_v19 = vld [vmem:[#allocation8 + $0xcc] sm:$0xf0]  ;;  %v1811_v22 = vld [vmem:[#allocation8 + $0x1a4] sm:$0xf0] }
  0x53   :  { %1035 = vmatpush.bf16.msrb.mxu0 %v1618_v45  ;;  %v2149_v45 = vld [vmem:[#allocation8 + $0x10c] sm:$0xf]  ;;  %v2191_v23 = vld [vmem:[#allocation8 + $0x25c] sm:$0xf]  ;;  %v1907_v24 = vld [vmem:[#allocation8 + $0x264] sm:$0xf0] }
  0x54   :  { %1049 = vmatpush.bf16.msrb.mxu1 %v1714_v50  ;;  %v1742_v48 = vor.u32 %v2149_v45, %v1739_v47  ;;  %v1847_v50 = vld [vmem:[#allocation8 + $0x1ec] sm:$0xf0]  ;;  %v1910_v26 = vor.u32 %v2191_v23, %v1907_v24  ;;  %v137_v33 = vld [vmem:[#allocation7] sm:$0xf]  ;;  %v1877_v24 = vld [vmem:[#allocation8 + $0x218] sm:$0xf] }
  0x55   :  { %1063 = vmatpush.bf16.msrb.mxu2 %v1810_v59  ;;  %v1850_v52 = vor.u32 %v2176_v49, %v1847_v50  ;;  %v1727_v59 = vld [vmem:[#allocation8 + $0xfc] sm:$0xf0]  ;;  %v1895_v31 = vld [vmem:[#allocation8 + $0x24c] sm:$0xf0]  ;;  %v140_v37 = vperm.slane %v137_v33, 1  ;;  %v141_v49 = vperm.slane %v137_v33, 2 }
  0x56   :  { %1077 = vmatpush.bf16.msrb.mxu3 %v1906_v61  ;;  %v2173_v61 = vld [vmem:[#allocation8 + $0x1cc] sm:$0xf]  ;;  %v2139_v47 = vld [vmem:[#allocation8 + $0xb8] sm:$0xf0]  ;;  %v1793_v51 = vld [vmem:[#allocation8 + $0x170] sm:$0xf] }
  0x57   :  { %1036 = vmatpush.bf16.msrb.mxu0 %v1606_v60  ;;  %v1730_v60 = vor.u32 %v2146_v57, %v1727_v59  ;;  %v1838_v0 = vor.u32 %v2173_v61, %v1835_v62  ;;  %v142_v53 = vperm.slane %v137_v33, 3  ;;  %v1685_v59 = vld [vmem:[#allocation8 + $0x98] sm:$0xf]  ;;  %s1454_s8 = sshll.u32 %s2418_s30, 4  ;;  %s1456_s10 = sshll.u32 %s2517_s7, 4  ;;  %s1455_s8 = int_to_ptr.vmem [resolvable:$true] %s1454_s8  ;;  %s1457_s10 = int_to_ptr.hbm [resolvable:$true] %s1456_s10 }
  0x58   :  { %1050 = vmatpush.bf16.msrb.mxu1 %v1702_v2  ;;  %v1934_v2 = vor.u32 %v2197_v63, %v1931_v1  ;;  %v1781_v63 = vld [vmem:[#allocation8 + $0x158] sm:$0xf]  ;;  %s2419_s11 = smov 128   ;;  %s2420_s12 = smov 8  }
  0x59   :  { %1064 = vmatpush.bf16.msrb.mxu2 %v1798_v13  ;;  %v1919_v13 = vld [vmem:[#allocation8 + $0x27c] sm:$0xf0] }
  0x5a   :  { %1078 = vmatpush.bf16.msrb.mxu3 %v1894_v14  ;;  %v1922_v14 = vor.u32 %v2194_v11, %v1919_v13  ;;  %v2211_v11 = vld [vmem:[#allocation8 + $0x2f8] sm:$0xf0]  ;;  %v2133_v13 = vld [vmem:[#allocation8 + $0x88] sm:$0xf0] }
  0x5b   :  { %1085 = vmatpush.bf16.msra.mxu0 %v1694_v3  ;;  %v2119_v3 = vld [vmem:[#allocation8 + $0x1c] sm:$0xf] }
  0x5c   :  { %1099 = vmatpush.bf16.msra.mxu1 %v1790_v7  ;;  %v1622_v6 = vor.u32 %v2119_v3, %v1619_v4  ;;  %v1715_v7 = vld [vmem:[#allocation8 + $0xe4] sm:$0xf0] }
  0x5d   :  { %1113 = vmatpush.bf16.msra.mxu2 %v1886_v15  ;;  %v1718_v8 = vor.u32 %v2143_v5, %v1715_v7  ;;  %v2116_v15 = vld [vmem:[#allocation8 + $0x4] sm:$0xf]  ;;  %v2187_v7 = vld [vmem:[#allocation8 + $0x238] sm:$0xf0] }
  0x5e   :  { %1127 = vmatpush.bf16.msra.mxu3 %v1982_v17  ;;  %v2140_v17 = vld [vmem:[#allocation8 + $0xc4] sm:$0xf] }
  0x5f   :  { %1086 = vmatpush.bf16.msra.mxu0 %v1682_v16  ;;  %v1607_v16 = vld [vmem:[#allocation8 + $0xc] sm:$0xf0]  ;;  %v1706_v20 = vor.u32 %v2140_v17, %v1703_v19  ;;  %v2157_v17 = vld [vmem:[#allocation8 + $0x148] sm:$0xf0] }
  0x60   :  { %1100 = vmatpush.bf16.msra.mxu1 %v1778_v21  ;;  %v1610_v18 = vor.u32 %v2116_v15, %v1607_v16  ;;  %v2167_v21 = vld [vmem:[#allocation8 + $0x19c] sm:$0xf]  ;;  %v1769_v16 = vld [vmem:[#allocation8 + $0x140] sm:$0xf] }
  0x61   :  { %1114 = vmatpush.bf16.msra.mxu2 %v1874_v27  ;;  %v1814_v25 = vor.u32 %v2167_v21, %v1811_v22  ;;  %v2164_v27 = vld [vmem:[#allocation8 + $0x184] sm:$0xf] }
  0x62   :  { %1128 = vmatpush.bf16.msra.mxu3 %v1970_v29 }
  0x63   :  { %1087 = vmatpush.bf16.msra.mxu0 %v1670_v28  ;;  %v1799_v28 = vld [vmem:[#allocation8 + $0x18c] sm:$0xf0] }
  0x64   :  { %1101 = vmatpush.bf16.msra.mxu1 %v1766_v30  ;;  %v1802_v29 = vor.u32 %v2164_v27, %v1799_v28  ;;  %v2188_v30 = vld [vmem:[#allocation8 + $0x244] sm:$0xf]  ;;  %v1770_v28 = vor.u32 %v2157_v17, %v1769_v16  ;;  %v1613_v16 = vld [vmem:[#allocation8 + $0x8] sm:$0xf]  ;;  %v2118_v17 = vld [vmem:[#allocation8 + $0x10] sm:$0xf0] }
  0x65   :  { %1115 = vmatpush.bf16.msra.mxu2 %v1862_v40  ;;  %v1898_v32 = vor.u32 %v2188_v30, %v1895_v31  ;;  %v1661_v30 = vld [vmem:[#allocation8 + $0x68] sm:$0xf]  ;;  %v2130_v31 = vld [vmem:[#allocation8 + $0x70] sm:$0xf0] }
  0x66   :  { %1129 = vmatpush.bf16.msra.mxu3 %v1958_v42 }
  0x67   :  { %1088 = vmatpush.bf16.msra.mxu0 %v1658_v35  ;;  %v139_v35 = vperm.slane %v137_v33, 0  ;;  %v2154_v33 = vld [vmem:[#allocation8 + $0x130] sm:$0xf0] }
  0x68   :  { %1102 = vmatpush.bf16.msra.mxu1 %v1754_v36 }
  0x69   :  { %1116 = vmatpush.bf16.msra.mxu2 %v1850_v52  ;;  %v2163_v52 = vld [vmem:[#allocation8 + $0x178] sm:$0xf0] }
  0x6a   :  { %1130 = vmatpush.bf16.msra.mxu3 %v1946_v54 }
  0x6b   :  { %1089 = vmatpush.bf16.msra.mxu0 %v1646_v46  ;;  %v1697_v46 = vld [vmem:[#allocation8 + $0xb0] sm:$0xf] }
  0x6c   :  { %1103 = vmatpush.bf16.msra.mxu1 %v1742_v48  ;;  %v1698_v56 = vor.u32 %v2139_v47, %v1697_v46 }
  0x6d   :  { %1117 = vmatpush.bf16.msra.mxu2 %v1838_v0  ;;  %v2160_v0 = vld [vmem:[#allocation8 + $0x160] sm:$0xf0] }
  0x6e   :  { %1131 = vmatpush.bf16.msra.mxu3 %v1934_v2  ;;  %v1782_v10 = vor.u32 %v2160_v0, %v1781_v63  ;;  %v2175_v63 = vld [vmem:[#allocation8 + $0x1d8] sm:$0xf0] }
  0x6f   :  { %1090 = vmatpush.bf16.msra.mxu0 %v1634_v58  ;;  %v1794_v58 = vor.u32 %v2163_v52, %v1793_v51  ;;  %v1949_v52 = vld [vmem:[#allocation8 + $0x2a8] sm:$0xf] }
  0x70   :  { %1104 = vmatpush.bf16.msra.mxu1 %v1730_v60  ;;  %v2136_v60 = vld [vmem:[#allocation8 + $0xa0] sm:$0xf0] }
  0x71   :  { %1118 = vmatpush.bf16.msra.mxu2 %v1826_v12  ;;  %v1686_v5 = vor.u32 %v2136_v60, %v1685_v59  ;;  %v1673_v12 = vld [vmem:[#allocation8 + $0x80] sm:$0xf] }
  0x72   :  { %1132 = vmatpush.bf16.msra.mxu3 %v1922_v14  ;;  %v1674_v23 = vor.u32 %v2133_v13, %v1673_v12 }
  0x73   :  { %1091 = vmatpush.bf16.msra.mxu0 %v1622_v6  ;;  %v1889_v6 = vld [vmem:[#allocation8 + $0x230] sm:$0xf] }
  0x74   :  { %1105 = vmatpush.bf16.msra.mxu1 %v1718_v8  ;;  %v1985_v8 = vld [vmem:[#allocation8 + $0x2f0] sm:$0xf] }
  0x75   :  { %1119 = vmatpush.bf16.msra.mxu2 %v1814_v25  ;;  %v1986_v22 = vor.u32 %v2211_v11, %v1985_v8  ;;  %v2184_v25 = vld [vmem:[#allocation8 + $0x220] sm:$0xf0] }
  0x76   :  { %1133 = vmatpush.bf16.msra.mxu3 %v1910_v26  ;;  %v1973_v26 = vld [vmem:[#allocation8 + $0x2d8] sm:$0xf]  ;;  %v2172_v11 = vld [vmem:[#allocation8 + $0x1c0] sm:$0xf0] }
  0x77   :  { %1092 = vmatpush.bf16.msra.mxu0 %v1610_v18 }
  0x78   :  { %1106 = vmatpush.bf16.msra.mxu1 %v1706_v20  ;;  %v1890_v20 = vor.u32 %v2187_v7, %v1889_v6  ;;  %v1721_v6 = vld [vmem:[#allocation8 + $0xe0] sm:$0xf]  ;;  %v2145_v7 = vld [vmem:[#allocation8 + $0xe8] sm:$0xf0] }
  0x79   :  { %1120 = vmatpush.bf16.msra.mxu2 %v1802_v29  ;;  %v2208_v29 = vld [vmem:[#allocation8 + $0x2e0] sm:$0xf0]  ;;  %v1722_v13 = vor.u32 %v2145_v7, %v1721_v6  ;;  %v2230_v6 = vld [vmem:[#allocation10 + $0x90] sm:$0xff] }
  0x7a   :  { %1134 = vmatpush.bf16.msra.mxu3 %v1898_v32  ;;  %v1757_v32 = vld [vmem:[#allocation8 + $0x128] sm:$0xf] }
  0xb7   :  { %v322_v34 = vpop.f32.mrf.mxu0 }
  0xb8   :  { %v336_v36 = vpop.f32.mrf.mxu1  ;;  %v323_v38 = vadd.f32 %v322_v34, %v139_v35  ;;  %v1878_v34 = vor.u32 %v2184_v25, %v1877_v24  ;;  %v2169_v24 = vld [vmem:[#allocation8 + $0x1a8] sm:$0xf0]  ;;  %v1614_v25 = vor.u32 %v2118_v17, %v1613_v16 }
  0xb9   :  { %v337_v39 = vadd.f32 %v336_v36, %v140_v37  ;;  %v1662_v36 = vor.u32 %v2130_v31, %v1661_v30  ;;  %v2219_v30 = vld [vmem:[#allocation10 + $0x38] sm:$0xff] }
  0xba   :  { %v369_v43 = vmax.f32 %v323_v38, 0.0  ;;  %v2181_v38 = vld [vmem:[#allocation8 + $0x208] sm:$0xf0] }
  0xbb   :  { %v370_v48 = vmax.f32 %v337_v39, 0.0  ;;  %v1758_v39 = vor.u32 %v2154_v33, %v1757_v32  ;;  %v1805_v33 = vld [vmem:[#allocation8 + $0x188] sm:$0xf] }
  0xbf   :  { %v350_v40 = vpop.f32.mrf.mxu2  ;;  %v324_v42 = vpop.f32.mrf.mxu0 }
  0xc0   :  { %v364_v41 = vpop.f32.mrf.mxu3  ;;  %v325_v44 = vadd.f32 %v324_v42, %v139_v35  ;;  %v338_v45 = vpop.f32.mrf.mxu1  ;;  %v351_v61 = vadd.f32 %v350_v40, %v141_v49  ;;  %v1974_v35 = vor.u32 %v2208_v29, %v1973_v26  ;;  %v1961_v40 = vld [vmem:[#allocation8 + $0x2c0] sm:$0xf]  ;;  %v1649_v42 = vld [vmem:[#allocation8 + $0x50] sm:$0xf]  ;;  %v2193_v29 = vld [vmem:[#allocation8 + $0x268] sm:$0xf0] }
  0xc1   :  { %v339_v50 = vadd.f32 %v338_v45, %v140_v37  ;;  %v365_v1 = vadd.f32 %v364_v41, %v142_v53  ;;  %v1865_v37 = vld [vmem:[#allocation8 + $0x200] sm:$0xf]  ;;  %v2205_v41 = vld [vmem:[#allocation8 + $0x2c8] sm:$0xf0]  ;;  %v2151_v45 = vld [vmem:[#allocation8 + $0x118] sm:$0xf0] }
  0xc2   :  { %v373_v54 = vmax.f32 %v325_v44, 0.0  ;;  %v371_v14 = vmax.f32 %v351_v61, 0.0  ;;  %v1745_v44 = vld [vmem:[#allocation8 + $0x110] sm:$0xf]  ;;  %v1866_v46 = vor.u32 %v2181_v38, %v1865_v37  ;;  %v1962_v47 = vor.u32 %v2205_v41, %v1961_v40  ;;  %v2217_v40 = vld [vmem:[#allocation10 + $0x28] sm:$0xff]  ;;  %v2216_v41 = vld [vmem:[#allocation10 + $0x20] sm:$0xff] }
  0xc3   :  { %v374_v55 = vmax.f32 %v339_v50, 0.0  ;;  %v372_v18 = vmax.f32 %v365_v1, 0.0  ;;  %v1746_v51 = vor.u32 %v2151_v45, %v1745_v44  ;;  %v1841_v61 = vld [vmem:[#allocation8 + $0x1d0] sm:$0xf]  ;;  %v2225_v45 = vld [vmem:[#allocation10 + $0x68] sm:$0xff] }
  0xc4   :  { %v2476_v57 = vpack.c.bf16 %v373_v54, %v369_v43  ;;  %v2127_v43 = vld [vmem:[#allocation8 + $0x58] sm:$0xf0]  ;;  %v1637_v54 = vld [vmem:[#allocation8 + $0x38] sm:$0xf]  ;;  %v1842_v8 = vor.u32 %v2175_v63, %v1841_v61  ;;  %v2226_v44 = vld [vmem:[#allocation10 + $0x70] sm:$0xff] }
  0xc5   :  { %v2478_v62 = vpack.c.bf16 %v374_v55, %v370_v48  ;;  %v1853_v48 = vld [vmem:[#allocation8 + $0x1e8] sm:$0xf]  ;;  %v1650_v50 = vor.u32 %v2127_v43, %v1649_v42  ;;  %v2124_v55 = vld [vmem:[#allocation8 + $0x40] sm:$0xf0]  ;;  %v2215_v42 = vld [vmem:[#allocation10 + $0x18] sm:$0xff] }
  0xc6   :  { %1037 = vmatmul.bf16.vlgmr.msrb.gmra.mxu0 %v2476_v57  ;;  %v1638_v0 = vor.u32 %v2124_v55, %v1637_v54  ;;  %v2227_v43 = vld [vmem:[#allocation10 + $0x78] sm:$0xff]  ;;  %v2233_v54 = vld [vmem:[#allocation10 + $0xa8] sm:$0xff] }
  0xc7   :  { %v352_v2 = vpop.f32.mrf.mxu2  ;;  %1051 = vmatmul.bf16.vlgmr.msrb.gmra.mxu1 %v2478_v62  ;;  %1141 = vmatpush.bf16.msrb.mxu0 %v1698_v56  ;;  %v1733_v56 = vld [vmem:[#allocation8 + $0xf8] sm:$0xf] }
  0xc8   :  { %v353_v3 = vadd.f32 %v352_v2, %v141_v49  ;;  %v366_v4 = vpop.f32.mrf.mxu3  ;;  %1155 = vmatpush.bf16.msrb.mxu1 %v1794_v58  ;;  %v2178_v49 = vld [vmem:[#allocation8 + $0x1f0] sm:$0xf0]  ;;  %v2148_v58 = vld [vmem:[#allocation8 + $0x100] sm:$0xf0]  ;;  %v1937_v2 = vld [vmem:[#allocation8 + $0x290] sm:$0xf] }
  0xc9   :  { %v367_v9 = vadd.f32 %v366_v4, %v142_v53  ;;  %v2202_v53 = vld [vmem:[#allocation8 + $0x2b0] sm:$0xf0]  ;;  %v1854_v59 = vor.u32 %v2178_v49, %v1853_v48  ;;  %v1734_v1 = vor.u32 %v2148_v58, %v1733_v56  ;;  %v1625_v4 = vld [vmem:[#allocation8 + $0x20] sm:$0xf] }
  0xca   :  { %v375_v15 = vmax.f32 %v353_v3, 0.0  ;;  %v1950_v60 = vor.u32 %v2202_v53, %v1949_v52  ;;  %v2199_v3 = vld [vmem:[#allocation8 + $0x298] sm:$0xf0]  ;;  %v2499_v52 = vld [vmem:[%s2514_s4] sm:$0x7]  ;;  %v2221_v53 = vld [vmem:[#allocation10 + $0x48] sm:$0xff] }
  0xcb   :  { %v376_v19 = vmax.f32 %v367_v9, 0.0  ;;  %1142 = vmatpush.bf16.msrb.mxu0 %v1686_v5  ;;  %v2121_v5 = vld [vmem:[#allocation8 + $0x28] sm:$0xf0]  ;;  %v1938_v9 = vor.u32 %v2199_v3, %v1937_v2  ;;  %v511_v55 = vperm.slane %v2499_v52, 0  ;;  %v2220_v58 = vld [vmem:[#allocation10 + $0x40] sm:$0xff] }
  0xcc   :  { %v2482_v21 = vpack.c.bf16 %v375_v15, %v371_v14  ;;  %1156 = vmatpush.bf16.msrb.mxu1 %v1782_v10  ;;  %v1829_v10 = vld [vmem:[#allocation8 + $0x1b8] sm:$0xf]  ;;  %v1626_v12 = vor.u32 %v2121_v5, %v1625_v4  ;;  %v2196_v15 = vld [vmem:[#allocation8 + $0x280] sm:$0xf0] }
  0xcd   :  { %v2484_v27 = vpack.c.bf16 %v376_v19, %v372_v18  ;;  %v1925_v14 = vld [vmem:[#allocation8 + $0x278] sm:$0xf]  ;;  %v1709_v18 = vld [vmem:[#allocation8 + $0xc8] sm:$0xf]  ;;  %v2142_v19 = vld [vmem:[#allocation8 + $0xd0] sm:$0xf0] }
  0xce   :  { %1065 = vmatmul.bf16.vlgmr.msrb.gmra.mxu2 %v2482_v21  ;;  %v1710_v26 = vor.u32 %v2142_v19, %v1709_v18  ;;  %v2228_v19 = vld [vmem:[#allocation10 + $0x80] sm:$0xff] }
  0xcf   :  { %1079 = vmatmul.bf16.vlgmr.msrb.gmra.mxu3 %v2484_v27  ;;  %1169 = vmatpush.bf16.msrb.mxu2 %v1890_v20  ;;  %v1830_v20 = vor.u32 %v2172_v11, %v1829_v10 }
  0xd0   :  { %1183 = vmatpush.bf16.msrb.mxu3 %v1986_v22  ;;  %1143 = vmatpush.bf16.msrb.mxu0 %v1674_v23  ;;  %v1926_v22 = vor.u32 %v2196_v15, %v1925_v14  ;;  %v1817_v23 = vld [vmem:[#allocation8 + $0x1a0] sm:$0xf]  ;;  %v512_v14 = vperm.slane %v2499_v52, 1 }
  0xd1   :  { %1157 = vmatpush.bf16.msrb.mxu1 %v1770_v28  ;;  %v1913_v28 = vld [vmem:[#allocation8 + $0x260] sm:$0xf]  ;;  %v1818_v31 = vor.u32 %v2169_v24, %v1817_v23 }
  0xd2   :  { %v1914_v32 = vor.u32 %v2193_v29, %v1913_v28 }
  0xd3   :  { %1170 = vmatpush.bf16.msrb.mxu2 %v1878_v34  ;;  %v2166_v34 = vld [vmem:[#allocation8 + $0x190] sm:$0xf0] }
  0xd4   :  { %1184 = vmatpush.bf16.msrb.mxu3 %v1974_v35  ;;  %1144 = vmatpush.bf16.msrb.mxu0 %v1662_v36  ;;  %v1901_v35 = vld [vmem:[#allocation8 + $0x248] sm:$0xf]  ;;  %v2190_v36 = vld [vmem:[#allocation8 + $0x250] sm:$0xf0]  ;;  %v1806_v37 = vor.u32 %v2166_v34, %v1805_v33 }
  0xd5   :  { %1158 = vmatpush.bf16.msrb.mxu1 %v1758_v39  ;;  %v1902_v38 = vor.u32 %v2190_v36, %v1901_v35  ;;  %v2218_v39 = vld [vmem:[#allocation10 + $0x30] sm:$0xff]  ;;  %v513_v36 = vperm.slane %v2499_v52, 2 }
  0xd6   :  { %1093 = vmatmul.bf16.vlgmr.msra.gmra.mxu0 %v2476_v57 }
  0xd7   :  { %1171 = vmatpush.bf16.msrb.mxu2 %v1866_v46  ;;  %1107 = vmatmul.bf16.vlgmr.msra.gmra.mxu1 %v2478_v62  ;;  %v2223_v46 = vld [vmem:[#allocation10 + $0x58] sm:$0xff] }
  0xd8   :  { %1185 = vmatpush.bf16.msrb.mxu3 %v1962_v47  ;;  %1145 = vmatpush.bf16.msrb.mxu0 %v1650_v50  ;;  %v2235_v47 = vld [vmem:[#allocation10 + $0xb8] sm:$0xff]  ;;  %v2222_v50 = vld [vmem:[#allocation10 + $0x50] sm:$0xff] }
  0xd9   :  { %1159 = vmatpush.bf16.msrb.mxu1 %v1746_v51  ;;  %v2234_v51 = vld [vmem:[#allocation10 + $0xb0] sm:$0xff] }
  0xdb   :  { %1172 = vmatpush.bf16.msrb.mxu2 %v1854_v59  ;;  %v2232_v59 = vld [vmem:[#allocation10 + $0xa0] sm:$0xff] }
  0xdc   :  { %1186 = vmatpush.bf16.msrb.mxu3 %v1950_v60  ;;  %1146 = vmatpush.bf16.msrb.mxu0 %v1638_v0 }
  0xdd   :  { %1160 = vmatpush.bf16.msrb.mxu1 %v1734_v1  ;;  %v2231_v1 = vld [vmem:[#allocation10 + $0x98] sm:$0xff] }
  0xde   :  { %1121 = vmatmul.bf16.vlgmr.msra.gmra.mxu2 %v2482_v21 }
  0xdf   :  { %1135 = vmatmul.bf16.vlgmr.msra.gmra.mxu3 %v2484_v27  ;;  %1173 = vmatpush.bf16.msrb.mxu2 %v1842_v8 }
  0xe0   :  { %1187 = vmatpush.bf16.msrb.mxu3 %v1938_v9  ;;  %1147 = vmatpush.bf16.msrb.mxu0 %v1626_v12 }
  0xe1   :  { %1161 = vmatpush.bf16.msrb.mxu1 %v1722_v13  ;;  %v2229_v13 = vld [vmem:[#allocation10 + $0x88] sm:$0xff] }
  0xe3   :  { %1174 = vmatpush.bf16.msrb.mxu2 %v1830_v20 }
  0xe4   :  { %1188 = vmatpush.bf16.msrb.mxu3 %v1926_v22  ;;  %1148 = vmatpush.bf16.msrb.mxu0 %v1614_v25 }
  0xe5   :  { %1162 = vmatpush.bf16.msrb.mxu1 %v1710_v26 }
  0xe7   :  { %1175 = vmatpush.bf16.msrb.mxu2 %v1818_v31  ;;  %1149 = vmatmul.bf16.vlgmr.msrb.gmra.mxu0 %v2476_v57  ;;  %v2214_v57 = vld [vmem:[#allocation10 + $0x10] sm:$0xff] }
  0xe8   :  { %1402 = vmatpush.bf16.msra.mxu0 %v2219_v30  ;;  %1189 = vmatpush.bf16.msrb.mxu3 %v1914_v32 }
  0xe9   :  { %1163 = vmatmul.bf16.vlgmr.msrb.gmra.mxu1 %v2478_v62  ;;  %v2213_v62 = vld [vmem:[#allocation10 + $0x8] sm:$0xff] }
  0xea   :  { %1416 = vmatpush.bf16.msra.mxu1 %v2227_v43 }
  0xeb   :  { %1176 = vmatpush.bf16.msrb.mxu2 %v1806_v37 }
  0xec   :  { %1190 = vmatpush.bf16.msrb.mxu3 %v1902_v38  ;;  %1403 = vmatpush.bf16.msra.mxu0 %v2218_v39 }
  0xee   :  { %1177 = vmatmul.bf16.vlgmr.msrb.gmra.mxu2 %v2482_v21  ;;  %1417 = vmatpush.bf16.msra.mxu1 %v2226_v44  ;;  %v2212_v21 = vld [vmem:[#allocation10] sm:$0xff] }
  0xef   :  { %1191 = vmatmul.bf16.vlgmr.msrb.gmra.mxu3 %v2484_v27  ;;  %v2224_v27 = vld [vmem:[#allocation10 + $0x60] sm:$0xff]  ;;  %1430 = vmatpush.bf16.msra.mxu2 %v2235_v47 }
  0xf0   :  { %1404 = vmatpush.bf16.msra.mxu0 %v2217_v40 }
  0xf2   :  { %1418 = vmatpush.bf16.msra.mxu1 %v2225_v45 }
  0xf3   :  { %1431 = vmatpush.bf16.msra.mxu2 %v2234_v51 }
  0xf4   :  { %1405 = vmatpush.bf16.msra.mxu0 %v2216_v41 }
  0xf6   :  { %1419 = vmatpush.bf16.msra.mxu1 %v2224_v27 }
  0xf7   :  { %1432 = vmatpush.bf16.msra.mxu2 %v2233_v54 }
  0xf8   :  { %1406 = vmatpush.bf16.msra.mxu0 %v2215_v42 }
  0xfa   :  { %1420 = vmatpush.bf16.msra.mxu1 %v2223_v46 }
  0xfb   :  { %1433 = vmatpush.bf16.msra.mxu2 %v2232_v59 }
  0xfc   :  { %1407 = vmatpush.bf16.msra.mxu0 %v2214_v57 }
  0xfe   :  { %1421 = vmatpush.bf16.msra.mxu1 %v2222_v50 }
  0xff   :  { %1434 = vmatpush.bf16.msra.mxu2 %v2231_v1 }
 0x100   :  { %1408 = vmatpush.bf16.msra.mxu0 %v2213_v62 }
 0x102   :  { %1422 = vmatpush.bf16.msra.mxu1 %v2221_v53 }
 0x103   :  { %1435 = vmatpush.bf16.msra.mxu2 %v2230_v6 }
 0x104   :  { %1409 = vmatpush.bf16.msra.mxu0 %v2212_v21 }
 0x106   :  { %1423 = vmatpush.bf16.msra.mxu1 %v2220_v58 }
 0x107   :  { %1436 = vmatpush.bf16.msra.mxu2 %v2229_v13 }
 0x10b   :  { %1437 = vmatpush.bf16.msra.mxu2 %v2228_v19 }
 0x143   :  { %v1038_v48 = vpop.f32.mrf.mxu0 }
 0x144   :  { %v1052_v49 = vpop.f32.mrf.mxu1  ;;  %v1039_v61 = vadd.f32 %v1038_v48, %v511_v55 }
 0x146   :  { %v1053_v2 = vadd.f32 %v1052_v49, %v1039_v61 }
 0x14b   :  { %v1040_v56 = vpop.f32.mrf.mxu0 }
 0x14c   :  { %v1054_v60 = vpop.f32.mrf.mxu1  ;;  %v1041_v3 = vadd.f32 %v1040_v56, %v511_v55  ;;  %v2250_v56 = vld [vmem:[%s2516_s6] ss:$0 sm:$0xff] }
 0x14e   :  { %v1055_v7 = vadd.f32 %v1054_v60, %v1041_v3 }
 0x151   :  { %v1066_v63 = vpop.f32.mrf.mxu2 }
 0x152   :  { %v1080_v0 = vpop.f32.mrf.mxu3  ;;  %v1067_v5 = vadd.f32 %v1066_v63, %v1053_v2 }
 0x153   :  { %v1094_v4 = vpop.f32.mrf.mxu0 }
 0x154   :  { %v1108_v8 = vpop.f32.mrf.mxu1  ;;  %v1081_v10 = vadd.f32 %v1080_v0, %v1067_v5  ;;  %v1095_v20 = vadd.f32 %v1094_v4, %v512_v14 }
 0x156   :  { %v1197_v17 = vmax.f32 %v1081_v10, 0.0  ;;  %v1109_v26 = vadd.f32 %v1108_v8, %v1095_v20 }
 0x159   :  { %v1068_v9 = vpop.f32.mrf.mxu2 }
 0x15a   :  { %v1069_v11 = vadd.f32 %v1068_v9, %v1055_v7  ;;  %v1082_v12 = vpop.f32.mrf.mxu3 }
 0x15b   :  { %v1096_v16 = vpop.f32.mrf.mxu0 }
 0x15c   :  { %v1083_v15 = vadd.f32 %v1082_v12, %v1069_v11  ;;  %v1110_v25 = vpop.f32.mrf.mxu1  ;;  %v1097_v28 = vadd.f32 %v1096_v16, %v512_v14 }
 0x15e   :  { %v1200_v18 = vmax.f32 %v1083_v15, 0.0  ;;  %v1111_v31 = vadd.f32 %v1110_v25, %v1097_v28 }
 0x160   :  { %v1203_v22 = vpack.c.bf16 %v1200_v18, %v1197_v17 }
 0x161   :  { %v1122_v23 = vpop.f32.mrf.mxu2 }
 0x162   :  { %v1136_v24 = vpop.f32.mrf.mxu3  ;;  %1410 = vmatmul.bf16.vlgmr.msra.gmra.mxu0 %v1203_v22  ;;  %v1123_v29 = vadd.f32 %v1122_v23, %v1109_v26 }
 0x164   :  { %v1150_v30 = vpop.f32.mrf.mxu0  ;;  %v1137_v33 = vadd.f32 %v1136_v24, %v1123_v29 }
 0x165   :  { %v1151_v41 = vadd.f32 %v1150_v30, %v513_v36 }
 0x166   :  { %v1164_v38 = vpop.f32.mrf.mxu1  ;;  %v1198_v39 = vmax.f32 %v1137_v33, 0.0 }
 0x167   :  { %v1165_v62 = vadd.f32 %v1164_v38, %v1151_v41 }
 0x169   :  { %v1124_v32 = vpop.f32.mrf.mxu2 }
 0x16a   :  { %v1125_v34 = vadd.f32 %v1124_v32, %v1111_v31  ;;  %v1138_v35 = vpop.f32.mrf.mxu3 }
 0x16c   :  { %v1139_v37 = vadd.f32 %v1138_v35, %v1125_v34  ;;  %v1152_v43 = vpop.f32.mrf.mxu0 }
 0x16d   :  { %v1153_v45 = vadd.f32 %v1152_v43, %v513_v36 }
 0x16e   :  { %v1201_v40 = vmax.f32 %v1139_v37, 0.0  ;;  %v1166_v27 = vpop.f32.mrf.mxu1 }
 0x16f   :  { %v1167_v46 = vadd.f32 %v1166_v27, %v1153_v45 }
 0x170   :  { %v1204_v42 = vpack.c.bf16 %v1201_v40, %v1198_v39 }
 0x171   :  { %v1178_v57 = vpop.f32.mrf.mxu2 }
 0x172   :  { %v1192_v44 = vpop.f32.mrf.mxu3  ;;  %1424 = vmatmul.bf16.vlgmr.msra.gmra.mxu1 %v1204_v42  ;;  %v1179_v21 = vadd.f32 %v1178_v57, %v1165_v62 }
 0x174   :  { %v1193_v48 = vadd.f32 %v1192_v44, %v1179_v21 }
 0x176   :  { %v1199_v52 = vmax.f32 %v1193_v48, 0.0 }
 0x179   :  { %v1180_v47 = vpop.f32.mrf.mxu2 }
 0x17a   :  { %v1181_v49 = vadd.f32 %v1180_v47, %v1167_v46  ;;  %v1194_v50 = vpop.f32.mrf.mxu3 }
 0x17c   :  { %v1195_v51 = vadd.f32 %v1194_v50, %v1181_v49 }
 0x17e   :  { %v1202_v53 = vmax.f32 %v1195_v51, 0.0 }
 0x180   :  { %v1205_v54 = vpack.c.bf16 %v1202_v53, %v1199_v52 }
 0x182   :  { %1438 = vmatmul.bf16.vlgmr.msra.gmra.mxu2 %v1205_v54 }
 0x1df   :  { %v1411_v55 = vpop.f32.mrf.mxu0 }
 0x1e0   :  { %v1412_v59 = vadd.f32 %v2250_v56, %v1411_v55 }
 0x1e7   :  { %v1413_v0 = vpop.f32.mrf.mxu0 }
 0x1e8   :  { %v1414_v2 = vadd.f32 %v2250_v56, %v1413_v0 }
 0x1ef   :  { %v1425_v58 = vpop.f32.mrf.mxu1 }
 0x1f0   :  { %v1426_v60 = vadd.f32 %v1425_v58, %v1412_v59 }
 0x1f7   :  { %v1427_v1 = vpop.f32.mrf.mxu1 }
 0x1f8   :  { %v1428_v3 = vadd.f32 %v1427_v1, %v1414_v2 }
 0x205   :  { %v1439_v61 = vpop.f32.mrf.mxu2 }
 0x206   :  { %v1440_v63 = vadd.f32 %v1439_v61, %v1426_v60 }
 0x208   :  { %2251 = vtanh.f32 %v1440_v63 }
 0x20d   :  { %v1441_v4 = vpop.f32.mrf.mxu2 }
 0x20e   :  { %v2252_v5 = vpop.eup %2251  ;;  %v1442_v6 = vadd.f32 %v1441_v4, %v1428_v3 }
 0x20f   :  { %v1446_v7 = vmul.f32 2.0, %v2252_v5 }
 0x210   :  { %2253 = vtanh.f32 %v1442_v6 }
 0x211   :  { %1448 = vst [vmem:[#allocation11] sm:$0xff] %v1446_v7 }
 0x216   :  { %v2254_v8 = vpop.eup %2253 }
 0x217   :  { %v1447_v9 = vmul.f32 2.0, %v2254_v8 }
 0x219   :  { %1449 = vst [vmem:[#allocation11 + $0x8] sm:$0xff] %v1447_v9 }
 0x21a   :  { %1462 = dma.vmem_to_hbm [thread:$0]  %s1455_s8, 256, %s1457_s10, [#allocation4], %s2419_s11, %s2419_s11, %s2420_s12  }
 0x21b   :  { %2405 = dma.done.wait [#allocation4], 256  }
 0x21c   :  { %2406 = vsyncadd [#allocation4], 4294967040 }
 0x21d   :  { %1467 = vsyncpa [#allocation3], 1 }
 0x21e   :  { %1468 = vsyncpa [#allocation6], 1 }
 0x21f   :  { %1469 = vsyncpa [#allocation9], 1 }
 0x220   :  { %1470 = vsyncpa [#allocation4], 1 }

</bundles_post_ra>
